<compile_context>
chip_gen: v7x
topology: tpu7x:2x2x1
jax: 0.10.0
libtpu: 0.0.40
codegen_flags: <defaults>
</compile_context>

<pallas_src>
import functools

import jax
import jax.numpy as jnp
from jax.experimental import pallas as pl
from jax.experimental.pallas import tpu as pltpu


def _nce_kernel(pred_ref, labels_ref, partial_ref, *, num_classes, num_rows,
                block_rows):
    """One (TN, C) row tile -> one per-tile partial sum of nce_i."""
    pred = pred_ref[...].astype(jnp.float32)            # (TN, C)
    labels = labels_ref[...]                             # (TN, 1) int32

    # Row-local log-softmax pieces, computed from the raw tile:
    #   lse = m + log(sum_c exp(pred - m))
    m = jnp.max(pred, axis=1, keepdims=True)              # (TN, 1)
    s_exp = jnp.sum(jnp.exp(pred - m), axis=1, keepdims=True)
    lse = m + jnp.log(s_exp)                               # (TN, 1)

    s_pred = jnp.sum(pred, axis=1, keepdims=True)          # (TN, 1)

    # pred[row, labels[row]] via iota-compare + select (no gather, no one-hot).
    class_ids = jax.lax.broadcasted_iota(jnp.int32, pred.shape, 1)
    picked = jnp.sum(jnp.where(class_ids == labels, pred, 0.0),
                     axis=1, keepdims=True)                # (TN, 1)

    numer = lse - picked                                   # -logp[label]
    denom = jnp.float32(num_classes) * lse - s_pred        # -sum_c logp
    nce = numer / denom                                    # (TN, 1)

    # Mask rows past the logical batch: the last partial tile's extra rows hold
    # stale VMEM (NaN/inf-prone through exp) and must not pollute the tile sum.
    row0 = pl.program_id(0) * block_rows
    row_ids = row0 + jax.lax.broadcasted_iota(jnp.int32, nce.shape, 0)
    nce = jnp.where(row_ids < num_rows, nce, 0.0)

    tile_sum = jnp.sum(nce)                                # scalar
    # Lane-dense, fully aligned (1, 8, 128) splat -> one unmasked vreg store.
    partial_ref[...] = jnp.broadcast_to(tile_sum, partial_ref.shape
                                        ).astype(jnp.float32)


def _vmem_limit_bytes():
    """Generation-aware scoped-VMEM limit (~0.69x of physical VMEM)."""
    try:
        cap = int(pltpu.get_tpu_info().vmem_capacity_bytes)
    except Exception:
        cap = 64 * 1024 * 1024   # conservative default (v7x per-core size)
    return (cap * 11) // 16      # ~88 MiB on v5e/v6e, ~44 MiB on v7x


def _pick_block_rows(n, c, in_itemsize, vmem_limit):
    c_pad = ((c + 127) // 128) * 128          # VMEM lane padding of the tile
    pack = max(8, 32 // in_itemsize)          # native sublane packing (8/16/32)

    # Per-tile-row VMEM bytes:
    #   2 double-buffered input rows (lane-padded, input dtype)
    # + ~4 full-tile f32 temporaries Mosaic materializes (upcast/exp/select)
    # + 2 double-buffered (row,1)->(row,128)-padded int32 label rows
    per_row = 2 * c_pad * in_itemsize + 4 * c_pad * 4 + 2 * 128 * 4
    budget = (vmem_limit * 3) // 4            # headroom for out blocks / stack

    tn = budget // max(1, per_row)
    # Keep the pred tile itself in the multi-MiB range: big enough to amortize
    # the ~0.35us per-grid-step overhead, small enough for nimble DMAs.
    tn = min(tn, (8 * 1024 * 1024) // max(1, c_pad * in_itemsize))
    # Guarantee >= 2 grid steps so the "parallel" batch axis can split across
    # v7x's two TensorCores and prefetch/compute can overlap on all chips.
    tn = min(tn, -(-n // 2))
    tn = max(pack, (tn // pack) * pack)
    return int(tn)


def normalized_cross_entropy(pred, labels, num_classes, scale=1.0,
                             block_rows=None):
    """pred: (N, num_classes) float, labels: (N,) int -> scalar float32."""
    n, c = pred.shape
    assert c == num_classes
    labels2d = labels.astype(jnp.int32).reshape(n, 1)
    itemsize = jnp.dtype(pred.dtype).itemsize

    vmem_limit = _vmem_limit_bytes()
    tn = (_pick_block_rows(n, c, itemsize, vmem_limit)
          if block_rows is None else int(block_rows))
    num_tiles = pl.cdiv(n, tn)

    cost = pl.CostEstimate(
        flops=int(7 * n * c),
        transcendentals=int(n * c),
        bytes_accessed=int(n * c * itemsize + n * 4
                           + num_tiles * 8 * 128 * 4),
    )

    partials = pl.pallas_call(
        functools.partial(_nce_kernel, num_classes=c, num_rows=n,
                          block_rows=tn),
        out_shape=jax.ShapeDtypeStruct((num_tiles, 8, 128), jnp.float32),
        grid=(num_tiles,),
        in_specs=[
            pl.BlockSpec((tn, c), lambda i: (i, 0)),   # pred row tile
            pl.BlockSpec((tn, 1), lambda i: (i, 0)),   # labels row tile
        ],
        out_specs=pl.BlockSpec((1, 8, 128), lambda i: (i, 0, 0)),
        compiler_params=pltpu.CompilerParams(
            dimension_semantics=("parallel",),          # megacore-friendly
            vmem_limit_bytes=int(vmem_limit),
        ),
        cost_estimate=cost,
    )(pred, labels2d)

    # Tiny O(num_tiles) finalization; the heavy O(N*C) stream stays in-kernel.
    total = jnp.sum(partials[:, 0, 0])
    return (scale * total / jnp.float32(n)).astype(jnp.float32)


def _reference(pred, labels, num_classes, scale=1.0):
    logp = jax.nn.log_softmax(pred.astype(jnp.float32), axis=1)
    one_hot = jax.nn.one_hot(labels, num_classes, dtype=jnp.float32)
    nce = -jnp.sum(one_hot * logp, axis=1) / (-jnp.sum(logp, axis=1))
    return scale * jnp.mean(nce)


if __name__ == "__main__":
    N, C = 20, 40          # batch=20, num_classes=40 (C not a lane multiple)
    scale = 2.0

    key = jax.random.PRNGKey(0)
    k1, k2 = jax.random.split(key)
    pred = jax.random.normal(k1, (N, C), dtype=jnp.float32)
    labels = jax.random.randint(k2, (N,), 0, C, dtype=jnp.int32)

    ref = _reference(pred, labels, num_classes=C, scale=scale)

    # Explicit small row tile -> 3 grid steps including a masked partial tile.
    out = normalized_cross_entropy(pred, labels, num_classes=C, scale=scale,
                                   block_rows=8)
    out = jax.block_until_ready(out)
    assert jnp.allclose(out, ref, atol=1e-5, rtol=1e-5), (out, ref)

    # Default auto-sized tile path (byte-budgeted, >=2 grid steps).
    out2 = jax.block_until_ready(
        normalized_cross_entropy(pred, labels, num_classes=C, scale=scale))
    assert jnp.allclose(out2, ref, atol=1e-5, rtol=1e-5), (out2, ref)

    print("KERNEL_OK")
</pallas_src>

<mosaic_0001>
module attributes {stable_mosaic.version = 11 : i64} {
  func.func @_nce_kernel(%arg0: i32, %arg1: memref<8x40xf32, #tpu.memory_space<vmem>>, %arg2: memref<8x1xi32, #tpu.memory_space<vmem>>, %arg3: memref<1x8x128xf32, #tpu.memory_space<vmem>>) attributes {dimension_semantics = [#tpu.dimension_semantics<parallel>], iteration_bounds = array<i64: 3>, scalar_prefetch = 0 : i64, scratch_operands = 0 : i64, tpu.core_type = #tpu.core_type<tc>, window_params = [{transform_indices = @transform_0, window_bounds = array<i64: 8, 40>}, {transform_indices = @transform_1, window_bounds = array<i64: 8, 1>}, {transform_indices = @transform_2, window_bounds = array<i64: 1, 8, 128>}]} {
    %c0 = arith.constant 0 : index
    %c0_0 = arith.constant 0 : index
    %0 = vector.load %arg1[%c0, %c0_0] : memref<8x40xf32, #tpu.memory_space<vmem>>, vector<8x40xf32>
    %c0_1 = arith.constant 0 : index
    %c0_2 = arith.constant 0 : index
    %1 = vector.load %arg2[%c0_1, %c0_2] : memref<8x1xi32, #tpu.memory_space<vmem>>, vector<8x1xi32>
    %cst = arith.constant dense<0xFF800000> : vector<8xf32>
    %2 = vector.multi_reduction <maximumf>, %0, %cst [1] : vector<8x40xf32> to vector<8xf32>
    %3 = vector.shape_cast %2 : vector<8xf32> to vector<8x1xf32>
    %4 = vector.broadcast %3 : vector<8x1xf32> to vector<8x40xf32>
    %5 = arith.subf %0, %4 : vector<8x40xf32>
    %6 = math.exp %5 : vector<8x40xf32>
    %cst_3 = arith.constant dense<0.000000e+00> : vector<8xf32>
    %7 = vector.multi_reduction <add>, %6, %cst_3 [1] : vector<8x40xf32> to vector<8xf32>
    %8 = vector.shape_cast %7 : vector<8xf32> to vector<8x1xf32>
    %9 = math.log %8 : vector<8x1xf32>
    %10 = arith.addf %3, %9 : vector<8x1xf32>
    %cst_4 = arith.constant dense<0.000000e+00> : vector<8xf32>
    %11 = vector.multi_reduction <add>, %0, %cst_4 [1] : vector<8x40xf32> to vector<8xf32>
    %12 = vector.shape_cast %11 : vector<8xf32> to vector<8x1xf32>
    %13 = tpu.iota {dimensions = array<i32: 1>} : vector<8x40xi32>
    %14 = vector.broadcast %1 : vector<8x1xi32> to vector<8x40xi32>
    %15 = arith.cmpi eq, %13, %14 : vector<8x40xi32>
    %cst_5 = arith.constant 0.000000e+00 : f32
    %16 = vector.broadcast %cst_5 : f32 to vector<8x40xf32>
    %17 = arith.select %15, %0, %16 : vector<8x40xi1>, vector<8x40xf32>
    %cst_6 = arith.constant dense<0.000000e+00> : vector<8xf32>
    %18 = vector.multi_reduction <add>, %17, %cst_6 [1] : vector<8x40xf32> to vector<8xf32>
    %19 = vector.shape_cast %18 : vector<8xf32> to vector<8x1xf32>
    %20 = arith.subf %10, %19 : vector<8x1xf32>
    %cst_7 = arith.constant 4.000000e+01 : f32
    %21 = vector.broadcast %cst_7 : f32 to vector<8x1xf32>
    %22 = arith.mulf %21, %10 : vector<8x1xf32>
    %23 = arith.subf %22, %12 : vector<8x1xf32>
    %24 = arith.divf %20, %23 : vector<8x1xf32>
    %c8_i32 = arith.constant 8 : i32
    %25 = arith.muli %arg0, %c8_i32 : i32
    %26 = tpu.iota {dimensions = array<i32: 0>} : vector<8x1xi32>
    %27 = vector.broadcast %25 : i32 to vector<8x1xi32>
    %28 = arith.addi %27, %26 : vector<8x1xi32>
    %c20_i32 = arith.constant 20 : i32
    %29 = vector.broadcast %c20_i32 : i32 to vector<8x1xi32>
    %30 = arith.cmpi slt, %28, %29 : vector<8x1xi32>
    %cst_8 = arith.constant 0.000000e+00 : f32
    %31 = vector.broadcast %cst_8 : f32 to vector<8x1xf32>
    %32 = arith.select %30, %24, %31 : vector<8x1xi1>, vector<8x1xf32>
    %33 = vector.shape_cast %32 : vector<8x1xf32> to vector<1x8x1xf32>
    %cst_9 = arith.constant dense<0.000000e+00> : vector<1xf32>
    %34 = vector.multi_reduction <add>, %33, %cst_9 [1, 2] : vector<1x8x1xf32> to vector<1xf32>
    %35 = vector.shape_cast %34 : vector<1xf32> to vector<1x1x1xf32>
    %36 = vector.extract %35[0, 0, 0] : f32 from vector<1x1x1xf32>
    %37 = vector.broadcast %36 : f32 to vector<1x8x128xf32>
    %c0_10 = arith.constant 0 : index
    %c0_11 = arith.constant 0 : index
    %c0_12 = arith.constant 0 : index
    %38 = vector.load %arg3[%c0_10, %c0_11, %c0_12] : memref<1x8x128xf32, #tpu.memory_space<vmem>>, vector<1x8x128xf32>
    tpu.vector_store %arg3[%c0_10, %c0_11, %c0_12], %37 {strides = array<i32>} : memref<1x8x128xf32, #tpu.memory_space<vmem>>, vector<1x8x128xf32>,
    return
  }
  func.func @transform_0(%arg0: i32) -> (i32, i32) {
    %c0_i32 = arith.constant 0 : i32
    %c0_i32_0 = arith.constant 0 : i32
    return %arg0, %c0_i32 : i32, i32
  }
  func.func @transform_1(%arg0: i32) -> (i32, i32) {
    %c0_i32 = arith.constant 0 : i32
    %c0_i32_0 = arith.constant 0 : i32
    return %arg0, %c0_i32 : i32, i32
  }
  func.func @transform_2(%arg0: i32) -> (i32, i32, i32) {
    %c0_i32 = arith.constant 0 : i32
    %c0_i32_0 = arith.constant 0 : i32
    %c0_i32_1 = arith.constant 0 : i32
    return %arg0, %c0_i32, %c0_i32_0 : i32, i32, i32
  }
}

</mosaic_0001>

<bundles_post_ra>
// kernel: tpu_custom_call.1
= control target key start
LH: loop header
LB: loop body
LE: loop exit
PB: predicated region body
PF: predicated region fallthrough
CT: control target
= control target key end

     0   :  { %7 = vsyncpa [#allocation3], 0  ;;  %s544_s0 = inlined_call_operand.vmem [shape: f32[20,40], index: 0, kind: input, shape index: {}]   ;;  %s545_s1 = inlined_call_operand.vmem [shape: s32[20,1], index: 1, kind: input, shape index: {}]   ;;  %s546_s2 = inlined_call_operand.hbm [shape: f32[3,8,128], index: 2, kind: output, shape index: {}]  }
   0x1   :  { %9 = vsyncpa [#allocation3 + $0x1], 0  ;;  %s436_s9 = smov 0   ;;  %s438_s10 = smov 0  }
   0x2   :  { %s440_s11 = smov 0   ;;  %s442_s12 = smov 0  }
   0x3 LB: > { %s457_s13 = sadd.s32 4294967295, %s417_s12   ;;  %s294_s14 = sadd.s32 4294967294, %s417_s12   ;;  %s417_s12 = sphi %s442_s12, %s552_s12   ;;  %s413_s11 = sphi %s440_s11, %s551_s11   ;;  %s409_s10 = sphi %s438_s10, %s550_s10   ;;  %s405_s9 = sphi %s436_s9, %s549_s9  }
   0x4   : > { %s461_s15 = sadd.s32 1, %s417_s12   ;;  %s74_s16 = sadd.s32 1, %s413_s11 }
   0x5   : > { %s71_s17 = ssub.s32 %s417_s12, %s461_s15  ;;  %p84_p0 = scmp.ne.s32.totalorder %s413_s11, %s409_s10 }
   0x6   : > { %p72_p1 = scmp.eq.s32.totalorder %s71_s17, 0  ;;  %p85_p2 = scmp.eq.s32.totalorder %s457_s13, 2 }
   0x7   : > { %p90_p3 = scmp.ne.s32.totalorder %s409_s10, %s405_s9  ;;  %p91_p4 = scmp.eq.s32.totalorder %s294_s14, 2 }
   0x8   : > { %s472_s18 = scalar_select %p72_p1, %s413_s11, %s74_s16  }
   0x9   : > { %p474_p5 = por %p85_p2, %p84_p0  ;;  %p478_p6 = por %p91_p4, %p90_p3 }
   0xa   : > { %p297_p7 = scmp.ge.s32.totalorder %s417_s12, 1  ;;  %p123_p8 = scmp.lt.s32.totalorder %s417_s12, 4 }
   0xc   : > { %p124_p9 = pnand %p297_p7, %p123_p8 }
   0xd   : > { %p148_p10 = scmp.lt.s32.totalorder (!%p124_p9), %s457_s13, 2  ;;  %v419_v0 = vmov (!%p124_p9), 0   ;;  %vm158_vm0 = vcmask (!%p124_p9), 326656   ;;  %v174_v7 = vlaneseq (!%p124_p9)  ;;  %s301_s29 = sshll.u32 (!%p124_p9), %s457_s13, 3  ;;  %vm196_vm3 = vcmask (!%p124_p9), 7168  }
   0xe   : > { %127 = sbr.rel (%p124_p9) target bundleno = 580 (0x244), region = 28  ;;  %348 = vset.pattern.permute.xlu0 (!%p124_p9), %v419_v0  ;;  %v192_v23 = vstv (!%p124_p9), %s301_s29  ;;  %s145_s30 = sand.u32 (!%p124_p9), 1, %s409_s10  }
   0xf   : > { %v175_v8 = vand.u32 (!%p124_p9), 127, %v174_v7  ;;  %v191_v22 = vshrl.u32 (!%p124_p9), %v174_v7, 7  ;;  %s298_s3 = sshll.u32 (!%p124_p9), %s145_s30, 3  ;;  %s303_s6 = sshll.u32 (!%p124_p9), %s457_s13, 7 }
  0x10   : > { %s147_s4 = scalar_lea.vmem (!%p124_p9), [#allocation2], %s298_s3  ;;  %s504_s16 = scalar_lea.hbm (!%p124_p9), %s546_s2, %s303_s6 }
  0x11   : > { %v193_v25 = vadd.s32 (!%p124_p9), %v192_v23, %v191_v22  ;;  %s223_s5 = sshll.u32 (!%p124_p9), %s147_s4, 4  ;;  %s210_s17 = scalar_lea.sflag (!%p124_p9), [#allocation3], %s145_s30  ;;  %s499_s5 = int_to_ptr.vmem [resolvable:$true] %s223_s5 }
  0x13   : > { %vm194_vm2 = vcmp.lt.s32.totalorder (!%p124_p9), %v193_v25, 20 }
  0x15   : > { %s149_s21 = scalar_select %p148_p10, %s457_s13, 2 }
  0x16   : > { %s420_s13 = smov [#allocation2]  }
  0x17   : > { %s299_s22 = sshll.u32 %s149_s21, 3  ;;  %s355_s21 = scalar_lea.vmem %s499_s5, 128 }
  0x18   : > { %s151_s25 = scalar_lea.vmem %s544_s0, %s299_s22  ;;  %s155_s28 = scalar_lea.vmem %s545_s1, %s299_s22 }
  0x19   : > { %v156_v1 = vld [vmem:[%s151_s25] sm:$0xff]  ;;  %p356_p11 = scmp.ne.s32.totalorder %s499_s5, %s355_s21  ;;  %s359_s22 = sshll.u32 %s420_s13, 4  ;;  %s360_s22 = int_to_ptr.vmem [resolvable:$false] %s359_s22 }
  0x1a   : > { %v159_v2 = vsel %vm158_vm0, %v156_v1, -inf  ;;  %v157_v3 = vld [vmem:[%s155_s28] sm:$0xff]  ;;  %v171_v12 = vsel %vm158_vm0, %v156_v1, 0.0  ;;  %s361_s23 = scalar_lea.vmem %s360_s22, 256  ;;  %p362_p0 = scmp.lt.s32.totalorder %s499_s5, %s360_s22 }
  0x1b   : > { %160 = vmax.xlane.f32.xlu0 %v159_v2  ;;  %p357_p12 = pnand %p356_p11, %p474_p5  ;;  %p363_p1 = scmp.lt.s32.totalorder %s361_s23, %s355_s21 }
  0x1d   : > { %p358_p13 = pneg %p357_p12  ;;  %p364_p2 = por %p363_p1, %p362_p0 }
  0x1f   : > { %p365_p3 = pnand %p364_p2, %p358_p13 }
  0x31   : > { %177 = vperm.xlu0 %348, %v157_v3  }
  0xa8   : > { %v161_v4 = vpop.xlane.xlu0 %160 }
  0xa9   : > { %v162_v5 = vsub.f32 %v156_v1, %v161_v4 }
  0xab   : > { %v163_v6 = vmul.f32 1.442695, %v162_v5 }
  0xad   : > { %349 = vpow2.f32 %v163_v6 }
  0xb0   : > { %v178_v9 = vpop.permute.xlu0 %177 }
  0xb1   : > { %vm179_vm1 = vcmp.eq.s32.totalorder %v175_v8, %v178_v9 }
  0xb2   : > { %v180_v13 = vsel %vm179_vm1, %v156_v1, 0.0 }
  0xb3   : > { %v181_v14 = vsel %vm158_vm0, %v180_v13, 0.0 }
  0xb7   : > { %v350_v10 = vpop.eup %349 }
  0xb8   : > { %v165_v11 = vsel %vm158_vm0, %v350_v10, 0.0 }
  0xb9   : > { %166 = vadd.xlane.f32.xlu1 %v165_v11 }
  0xbd   : > { %172 = vadd.xlane.f32.xlu1 %v171_v12 }
  0xc1   : > { %182 = vadd.xlane.f32.xlu1 %v181_v14 }
 0x146   : > { %v167_v15 = vpop.xlane.xlu1 %166 }
 0x147   : > { %351 = vlog2.f32 %v167_v15 }
 0x14a   : > { %v173_v20 = vpop.xlane.xlu1 %172 }
 0x14e   : > { %v183_v24 = vpop.xlane.xlu1 %182 }
 0x151   : > { %v352_v16 = vpop.eup %351 }
 0x152   : > { %v169_v17 = vmul.f32 0.6931472, %v352_v16 }
 0x154   : > { %v170_v18 = vadd.f32 %v169_v17, %v161_v4 }
 0x156   : > { %v185_v19 = vmul.f32 40.0, %v170_v18  ;;  %v184_v26 = vsub.f32 %v170_v18, %v183_v24 }
 0x158   : > { %v186_v21 = vsub.f32 %v185_v19, %v173_v20 }
 0x15a   : > { %353 = vrcp.f32 %v186_v21 }
 0x164   : > { %v354_v27 = vpop.eup %353 }
 0x165   : > { %v188_v28 = vmul.f32 %v354_v27, %v184_v26 }
 0x167   : > { %v195_v29 = vsel %vm194_vm2, %v188_v28, 0.0 }
 0x168   : > { %v197_v30 = vsel %vm196_vm3, %v195_v29, 0.0 }
 0x169   : > { %198 = vadd.xlane.f32.xlu1 %v197_v30 }
 0x1f6   : > { %v199_v31 = vpop.xlane.xlu1 %198 }
 0x1f7   : > { %v200_v32 = vrot.slane %v199_v31, 4 }
 0x1f9   : > { %v201_v33 = vadd.f32 %v200_v32, %v199_v31 }
 0x1fb   : > { %v202_v34 = vrot.slane %v201_v33, 2 }
 0x1fd   : > { %v203_v35 = vadd.f32 %v202_v34, %v201_v33 }
 0x1ff   : > { %v204_v36 = vrot.slane %v203_v35, 1 }
 0x201   : > { %v205_v37 = vadd.f32 %v204_v36, %v203_v35 }
 0x203   : > { %306 = vpush %v205_v37 }
 0x234   : > { %s307_s7 = spop %306 }
 0x235   : > { %v207_v38 = vstv %s307_s7 }
 0x236   : > { %208 = vst [vmem:[%s147_s4] sm:$0xff] %v207_v38 }
 0x237   : > { %368 = shalt.err (!%p365_p3)
}
 0x238   : > { %s369_s24 = scalar_lea.hbm %s504_s16, 128  ;;  %s373_s27 = scalar_lea.hbm %s546_s2, 384 }
 0x239   : > { %p370_p4 = scmp.ne.s32.totalorder %s504_s16, %s369_s24  ;;  %p374_p9 = scmp.lt.u32.totalorder %s504_s16, %s546_s2 }
 0x23a   : > { %p375_p10 = scmp.lt.u32.totalorder %s373_s27, %s369_s24  ;;  %p377_p12 = scmp.lt.u32.totalorder %s369_s24, %s504_s16 }
 0x23b   : > { %p371_p7 = pnand %p370_p4, %p474_p5 }
 0x23c   : > { %p376_p11 = por %p375_p10, %p374_p9 }
 0x23d   : > { %p372_p8 = pneg %p371_p7 }
 0x23e   : > { %p378_p13 = por %p377_p12, %p376_p11 }
 0x240   : > { %p379_p0 = pnand %p378_p13, %p372_p8 }
 0x242   : > { %382 = shalt.err (!%p379_p0)
}
 0x243   : > { %308 = dma.vmem_to_hbm [thread:$0]  (%p474_p5), %s499_s5, 128, %s504_s16, %s210_s17  }
 0x244 PF: > { %p314_p1 = scmp.ge.s32.totalorder %s417_s12, 2  ;;  %s235_s30 = sand.u32 1, %s405_s9  }
 0x245   : > { %s236_s3 = scalar_lea.sflag [#allocation3], %s235_s30 }
 0x246   : > { %p311_p2 = pnand %p314_p1, %p478_p6 }
 0x248   : > { %400 = dma.done.wait (!%p311_p2), %s236_s3, 128  }
 0x249   : > { %402 = vsyncadd (!%p311_p2), %s236_s3, 4294967168  ;;  %p12_p3 = scmp.ge.s32.totalorder %s461_s15, 5   ;;  %s549_s9 = smov %s409_s10 }
 0x24a   : > { %s550_s10 = smov %s413_s11  ;;  %s551_s11 = smov %s472_s18 }
 0x24b   : > { %s552_s12 = smov %s461_s15  ;;  %14 = sbr.rel (!%p12_p3) target bundleno = 3 (0x3), region = 66 }
 0x252   :  { %241 = vsyncpa [#allocation3], 1 }
 0x253   :  { %243 = vsyncpa [#allocation3 + $0x1], 1 }

</bundles_post_ra>
